<compile_context>
chip_gen: v7x
topology: tpu7x:2x2x1
jax: 0.10.0
libtpu: 0.0.40
codegen_flags: <defaults>
</compile_context>

<pallas_src>
import jax
import jax.numpy as jnp
from jax.experimental import pallas as pl
from jax.experimental.pallas import tpu as pltpu


def _label_smooth_body(preds_ref, targets_ref, out_ref, weights_ref, *,
                       smooth, num_classes):
    preds = preds_ref[...].astype(jnp.float32)            # (TM, C)
    tm, c = preds.shape
    tgt = targets_ref[...]                                 # (TM, 1) int32

    lb_pos = jnp.float32(1.0 - smooth)
    lb_neg = jnp.float32(smooth / (num_classes - 1)) if num_classes > 1 \
        else jnp.float32(0.0)

    # Numerically stable log-softmax pieces: shifted logits + log-sum-exp.
    m = jnp.max(preds, axis=1, keepdims=True)              # (TM, 1)
    shifted = preds - m                                     # (TM, C)
    lse = jnp.log(jnp.sum(jnp.exp(shifted), axis=1, keepdims=True))  # (TM, 1)

    # (1, C) iota broadcast against (TM, 1) targets -> (TM, C) bool mask,
    # without materializing a (TM, C) int32 iota.
    col = jax.lax.broadcasted_iota(jnp.int32, (1, c), 1)
    tgt_mask = col == tgt                                    # (TM, C)

    # loss_i = sum_j coef_ij * (lse_i - shifted_ij)
    #        = lse_i * rowsum(coef)_i - rowsum(coef * shifted)_i
    if weights_ref is None:
        coef = jnp.where(tgt_mask, lb_pos, lb_neg)                       # (TM, C)
        coef_sum = lb_pos + jnp.float32(num_classes - 1) * lb_neg        # scalar
        cs = jnp.sum(coef * shifted, axis=1, keepdims=True)              # (TM, 1)
        loss = coef_sum * lse - cs
    else:
        w = weights_ref[...].astype(jnp.float32)                         # (1, C)
        coef = jnp.where(tgt_mask, lb_pos, lb_neg) * w                   # (TM, C)
        coef_sum = jnp.sum(coef, axis=1, keepdims=True)                  # (TM, 1)
        cs = jnp.sum(coef * shifted, axis=1, keepdims=True)              # (TM, 1)
        loss = coef_sum * lse - cs

    # Lane-dense store: (TM, 1) -> (1, 1, TM) row block.
    out_ref[...] = loss.reshape(1, 1, tm)


def label_smooth_entropy(preds, targets, *, smooth=0.1, class_weights=None,
                         size_average="mean", block_rows=None):
    """JAX/Pallas equivalent of LabelSmoothEntropy.forward.

    preds:   (N, C) float (f32 or bf16 - streamed in its native dtype)
    targets: (N,)   int
    returns: scalar (mean/sum) or (N,) per-example loss.
    """
    n, c = preds.shape
    targets2d = targets.astype(jnp.int32).reshape(n, 1)

    # ---- tile choice (rows per grid step) ----
    itemsize = jnp.dtype(preds.dtype).itemsize
    n8 = max(8, -(-n // 8) * 8)
    if block_rows is None:
        # ~4 MiB per pipelined preds buffer: with double buffering plus a few
        # (TM, C) f32 temporaries in the body this stays well inside v7x's
        # 64 MiB VMEM while >=512 rows still hit ~85% of HBM roofline.
        budget_bytes = 4 * 1024 * 1024
        max_rows = max(8, budget_bytes // max(1, c * itemsize))
        tm = min(1024, n8, max_rows)
        # Keep at least 2 grid steps when N allows (v7x megacore + pipeline depth).
        if n8 >= 16:
            tm = min(tm, max(8, ((n8 // 2) // 8) * 8))
    else:
        tm = min(block_rows, n8)
    tm = max(8, (tm // 8) * 8)            # sublane-aligned

    nb = -(-n // tm)                      # ragged last block; NO padding copy
    grid = (nb,)

    in_specs = [pl.BlockSpec((tm, c), lambda i: (i, 0)),
                pl.BlockSpec((tm, 1), lambda i: (i, 0))]
    args = [preds, targets2d]

    if class_weights is not None:
        in_specs.append(pl.BlockSpec((1, c), lambda i: (0, 0)))
        args.append(jnp.asarray(class_weights, dtype=jnp.float32).reshape(1, c))

        def kernel(p_ref, t_ref, w_ref, o_ref):
            _label_smooth_body(p_ref, t_ref, o_ref, w_ref,
                               smooth=smooth, num_classes=c)
    else:
        def kernel(p_ref, t_ref, o_ref):
            _label_smooth_body(p_ref, t_ref, o_ref, None,
                               smooth=smooth, num_classes=c)

    out = pl.pallas_call(
        kernel,
        out_shape=jax.ShapeDtypeStruct((nb, 1, tm), jnp.float32),
        grid=grid,
        in_specs=in_specs,
        out_specs=pl.BlockSpec((1, 1, tm), lambda i: (i, 0, 0)),
        compiler_params=pltpu.CompilerParams(
            dimension_semantics=("parallel",),
            vmem_limit_bytes=48 * 1024 * 1024),
    )(*args)

    loss = out.reshape(-1)[:n]             # drop ragged-tail rows
    if size_average == "mean":
        return jnp.mean(loss)               # divide by TRUE N (matches nn.Module)
    elif size_average == "sum":
        return jnp.sum(loss)
    return loss


def _reference(preds, targets, smooth=0.1, class_weights=None, size_average="mean"):
    n, c = preds.shape
    lb_pos = 1.0 - smooth
    lb_neg = smooth / (c - 1)
    onehot = jax.nn.one_hot(targets, c, dtype=jnp.float32)
    smoothed = onehot * lb_pos + (1.0 - onehot) * lb_neg
    log_soft = jax.nn.log_softmax(preds.astype(jnp.float32), axis=1)
    loss = -log_soft * smoothed
    if class_weights is not None:
        loss = loss * class_weights[None, :]
    loss = loss.sum(1)
    if size_average == "mean":
        return loss.mean()
    elif size_average == "sum":
        return loss.sum()
    return loss


if __name__ == "__main__":
    key = jax.random.PRNGKey(0)
    k1, k2, k3, k4 = jax.random.split(key, 4)

    # Small case: batch=8, classes=32; exercise all three reduction modes.
    N, C = 8, 32
    preds = jax.random.normal(k1, (N, C), dtype=jnp.float32)
    targets = jax.random.randint(k2, (N,), 0, C, dtype=jnp.int32)

    for sa in ("mean", "sum", None):
        got = jax.block_until_ready(
            label_smooth_entropy(preds, targets, smooth=0.1, size_average=sa))
        ref = _reference(preds, targets, smooth=0.1, size_average=sa)
        assert jnp.allclose(got, ref, rtol=1e-4, atol=1e-5), (sa, got, ref)

    # Multi-block + ragged last block + class-weights case:
    # batch=272 tiled at 128 rows -> grid of 3 with a 16-row ragged tail (no pad copy).
    N2, C2 = 272, 32
    preds2 = jax.random.normal(k3, (N2, C2), dtype=jnp.float32)
    targets2 = jax.random.randint(k4, (N2,), 0, C2, dtype=jnp.int32)
    cw = jnp.linspace(0.5, 1.5, C2, dtype=jnp.float32)
    got2 = jax.block_until_ready(
        label_smooth_entropy(preds2, targets2, smooth=0.1, class_weights=cw,
                             size_average="mean", block_rows=128))
    ref2 = _reference(preds2, targets2, smooth=0.1, class_weights=cw,
                      size_average="mean")
    assert jnp.allclose(got2, ref2, rtol=1e-4, atol=1e-5), (got2, ref2)

    # Auto tile choice path (no block_rows), bf16 logits streamed without upcast.
    preds3 = preds2.astype(jnp.bfloat16)
    got3 = jax.block_until_ready(
        label_smooth_entropy(preds3, targets2, smooth=0.1, size_average="mean"))
    ref3 = _reference(preds3.astype(jnp.float32), targets2, smooth=0.1,
                      size_average="mean")
    assert jnp.allclose(got3, ref3, rtol=2e-2, atol=2e-2), (got3, ref3)

    print("KERNEL_OK")
</pallas_src>

<mosaic_0001>
module attributes {stable_mosaic.version = 11 : i64} {
  func.func @kernel(%arg0: i32, %arg1: memref<8x32xf32, #tpu.memory_space<vmem>>, %arg2: memref<8x1xi32, #tpu.memory_space<vmem>>, %arg3: memref<1x1x8xf32, #tpu.memory_space<vmem>>) attributes {dimension_semantics = [#tpu.dimension_semantics<parallel>], iteration_bounds = array<i64: 1>, scalar_prefetch = 0 : i64, scratch_operands = 0 : i64, tpu.core_type = #tpu.core_type<tc>, window_params = [{transform_indices = @transform_0, window_bounds = array<i64: 8, 32>}, {transform_indices = @transform_1, window_bounds = array<i64: 8, 1>}, {transform_indices = @transform_2, window_bounds = array<i64: 1, 1, 8>}]} {
    %c0 = arith.constant 0 : index
    %c0_0 = arith.constant 0 : index
    %0 = vector.load %arg1[%c0, %c0_0] : memref<8x32xf32, #tpu.memory_space<vmem>>, vector<8x32xf32>
    %c0_1 = arith.constant 0 : index
    %c0_2 = arith.constant 0 : index
    %1 = vector.load %arg2[%c0_1, %c0_2] : memref<8x1xi32, #tpu.memory_space<vmem>>, vector<8x1xi32>
    %cst = arith.constant dense<0xFF800000> : vector<8xf32>
    %2 = vector.multi_reduction <maximumf>, %0, %cst [1] : vector<8x32xf32> to vector<8xf32>
    %3 = vector.shape_cast %2 : vector<8xf32> to vector<8x1xf32>
    %4 = vector.broadcast %3 : vector<8x1xf32> to vector<8x32xf32>
    %5 = arith.subf %0, %4 : vector<8x32xf32>
    %6 = math.exp %5 : vector<8x32xf32>
    %cst_3 = arith.constant dense<0.000000e+00> : vector<8xf32>
    %7 = vector.multi_reduction <add>, %6, %cst_3 [1] : vector<8x32xf32> to vector<8xf32>
    %8 = vector.shape_cast %7 : vector<8xf32> to vector<8x1xf32>
    %9 = math.log %8 : vector<8x1xf32>
    %10 = tpu.iota {dimensions = array<i32: 1>} : vector<1x32xi32>
    %11 = vector.broadcast %10 : vector<1x32xi32> to vector<8x32xi32>
    %12 = vector.broadcast %1 : vector<8x1xi32> to vector<8x32xi32>
    %13 = arith.cmpi eq, %11, %12 : vector<8x32xi32>
    %cst_4 = arith.constant 0.899999976 : f32
    %cst_5 = arith.constant 0.0032258064 : f32
    %14 = vector.broadcast %cst_4 : f32 to vector<8x32xf32>
    %15 = vector.broadcast %cst_5 : f32 to vector<8x32xf32>
    %16 = arith.select %13, %14, %15 : vector<8x32xi1>, vector<8x32xf32>
    %cst_6 = arith.constant 3.100000e+01 : f32
    %cst_7 = arith.constant 0.0032258064 : f32
    %17 = arith.mulf %cst_6, %cst_7 : f32
    %cst_8 = arith.constant 0.899999976 : f32
    %18 = arith.addf %cst_8, %17 : f32
    %19 = arith.mulf %16, %5 : vector<8x32xf32>
    %cst_9 = arith.constant dense<0.000000e+00> : vector<8xf32>
    %20 = vector.multi_reduction <add>, %19, %cst_9 [1] : vector<8x32xf32> to vector<8xf32>
    %21 = vector.shape_cast %20 : vector<8xf32> to vector<8x1xf32>
    %22 = vector.broadcast %18 : f32 to vector<8x1xf32>
    %23 = arith.mulf %22, %9 : vector<8x1xf32>
    %24 = arith.subf %23, %21 : vector<8x1xf32>
    %25 = vector.shape_cast %24 : vector<8x1xf32> to vector<1x1x8xf32>
    %c0_10 = arith.constant 0 : index
    %c0_11 = arith.constant 0 : index
    %c0_12 = arith.constant 0 : index
    %26 = vector.load %arg3[%c0_10, %c0_11, %c0_12] : memref<1x1x8xf32, #tpu.memory_space<vmem>>, vector<1x1x8xf32>
    tpu.vector_store %arg3[%c0_10, %c0_11, %c0_12], %25 {strides = array<i32>} : memref<1x1x8xf32, #tpu.memory_space<vmem>>, vector<1x1x8xf32>,
    return
  }
  func.func @transform_0(%arg0: i32) -> (i32, i32) {
    %c0_i32 = arith.constant 0 : i32
    %c0_i32_0 = arith.constant 0 : i32
    return %arg0, %c0_i32 : i32, i32
  }
  func.func @transform_1(%arg0: i32) -> (i32, i32) {
    %c0_i32 = arith.constant 0 : i32
    %c0_i32_0 = arith.constant 0 : i32
    return %arg0, %c0_i32 : i32, i32
  }
  func.func @transform_2(%arg0: i32) -> (i32, i32, i32) {
    %c0_i32 = arith.constant 0 : i32
    %c0_i32_0 = arith.constant 0 : i32
    %c0_i32_1 = arith.constant 0 : i32
    return %arg0, %c0_i32, %c0_i32_0 : i32, i32, i32
  }
}

</mosaic_0001>

<bundles_post_ra>
// kernel: tpu_custom_call.1
= control target key start
LH: loop header
LB: loop body
LE: loop exit
PB: predicated region body
PF: predicated region fallthrough
CT: control target
= control target key end

     0   :  { %vm14_vm0 = vcmask 261120   ;;  %s131_s0 = inlined_call_operand.vmem [shape: f32[8,32], index: 0, kind: input, shape index: {}]   ;;  %s132_s1 = inlined_call_operand.vmem [shape: s32[8,1], index: 1, kind: input, shape index: {}]   ;;  %s133_s2 = inlined_call_operand.hbm [shape: f32[1,1,8], index: 2, kind: output, shape index: {}]  }
   0x1   :  { %v12_v0 = vld [vmem:[%s131_s0] sm:$0xff] }
   0x2   :  { %7 = vsyncpa [#allocation3], 0  ;;  %v15_v1 = vsel %vm14_vm0, %v12_v0, -inf  ;;  %v92_v2 = vmov 0   ;;  %v13_v3 = vld [vmem:[%s132_s1] sm:$0xff]  ;;  %v26_v6 = vlaneseq  ;;  %s94_s0 = smov [#allocation2]  }
   0x3   :  { %63 = vset.pattern.permute.xlu0 %v92_v2  ;;  %v93_v10 = vmov 0.0032258064   ;;  %s52_s1 = sshll.u32 %s94_s0, 4  ;;  %vm44_vm2 = vcmask 57344   ;;  %s53_s1 = int_to_ptr.vmem [resolvable:$true] %s52_s1 }
   0x4   :  { %16 = vmax.xlane.f32.xlu0 %v15_v1  ;;  %v27_v8 = vand.u32 127, %v26_v6  ;;  %v40_v17 = vshrl.u32 %v26_v6, 7  ;;  %s68_s13 = scalar_lea.vmem %s53_s1, 16  ;;  %s72_s14 = scalar_lea.vmem %s53_s1, 32 }
   0x5   :  { %p69_p0 = scmp.ne.s32.totalorder %s53_s1, %s68_s13  ;;  %p73_p1 = scmp.lt.s32.totalorder %s53_s1, %s53_s1 }
   0x6   :  { %v41_v20 = vsub.s32 %v27_v8, %v40_v17  ;;  %p74_p2 = scmp.lt.s32.totalorder %s72_s14, %s68_s13 }
   0x8   :  { %p75_p3 = por %p74_p2, %p73_p1 }
   0xa   :  { %p76_p4 = pnand %p75_p3, %p69_p0 }
  0x1a   :  { %29 = vperm.xlu0 %63, %v13_v3  }
  0x91   :  { %v17_v4 = vpop.xlane.xlu0 %16 }
  0x92   :  { %v18_v5 = vsub.f32 %v12_v0, %v17_v4 }
  0x94   :  { %v19_v7 = vmul.f32 1.442695, %v18_v5 }
  0x96   :  { %64 = vpow2.f32 %v19_v7 }
  0x99   :  { %v30_v9 = vpop.permute.xlu0 %29 }
  0x9a   :  { %vm31_vm1 = vcmp.eq.s32.totalorder %v27_v8, %v30_v9 }
  0x9b   :  { %v32_v11 = vsel %vm31_vm1, 0.9, %v93_v10 }
  0x9c   :  { %v33_v14 = vmul.f32 %v32_v11, %v18_v5 }
  0x9e   :  { %v34_v15 = vsel %vm14_vm0, %v33_v14, 0.0 }
  0xa0   :  { %v65_v12 = vpop.eup %64 }
  0xa1   :  { %v21_v13 = vsel %vm14_vm0, %v65_v12, 0.0 }
  0xa2   :  { %22 = vadd.xlane.f32.xlu1 %v21_v13 }
  0xa6   :  { %35 = vadd.xlane.f32.xlu1 %v34_v15 }
 0x12f   :  { %v23_v16 = vpop.xlane.xlu1 %22 }
 0x130   :  { %66 = vlog2.f32 %v23_v16 }
 0x133   :  { %v36_v21 = vpop.xlane.xlu1 %35 }
 0x13a   :  { %v67_v18 = vpop.eup %66 }
 0x13b   :  { %v25_v19 = vmul.f32 0.6931472, %v67_v18 }
 0x13d   :  { %v37_v22 = vsub.f32 %v25_v19, %v36_v21 }
 0x13f   :  { %v42_v23 = vrot.slane %v37_v22, %v41_v20 }
 0x141   :  { %45 = vst.msk [vmem:[#allocation2] sm:$0x1] %vm44_vm2, %v42_v23 }
 0x142   :  { %79 = shalt.err (!%p76_p4)
}
 0x143   :  { %s80_s17 = scalar_lea.hbm %s133_s2, 16 }
 0x144   :  { %p81_p5 = scmp.ne.s32.totalorder %s133_s2, %s80_s17  ;;  %p84_p6 = scmp.lt.u32.totalorder %s80_s17, %s133_s2 }
 0x146   :  { %p86_p7 = pnand %p84_p6, %p81_p5 }
 0x148   :  { %89 = shalt.err (!%p86_p7)
}
 0x149   :  { %55 = dma.vmem_to_hbm [thread:$0]  %s53_s1, 16, %s133_s2, [#allocation3]  }
 0x14a   :  { %90 = dma.done.wait [#allocation3], 16  }
 0x14b   :  { %91 = vsyncadd [#allocation3], 4294967280 }
 0x14c   :  { %59 = vsyncpa [#allocation3], 1 }

</bundles_post_ra>
